<compile_context>
chip_gen: v6e
topology: v6e:2x2x1
jax: 0.10.0
libtpu: 0.0.40
codegen_flags: <defaults>
</compile_context>

<pallas_src>
import jax
import jax.numpy as jnp
from jax import lax
from jax.experimental import pallas as pl
from jax.experimental.pallas import tpu as pltpu

VMEM_LIMIT = 32 * 1024 * 1024   # raise v5e's 16MiB scoped default; <= v7x physical


# -----------------------------------------------------------------------------
# Kernel 1: batched GRU input projection  gi = x @ W_ih + b_ih  for ALL
# timesteps at once (grid axis = direction; both directions share x).
# -----------------------------------------------------------------------------
def gru_proj_kernel(x_ref, w_ref, b_ref, gi_ref):
    gi_ref[...] = (jnp.dot(x_ref[...], w_ref[...],
                           preferred_element_type=jnp.float32)
                   + b_ref[...]).astype(gi_ref.dtype)


def gru_input_proj(x_flat, wih, bih):
    # x_flat: (N, Din) bf16, wih: (2, Din, 3H) bf16, bih: (2, 1, 3H) f32
    N, Din = x_flat.shape
    G = wih.shape[-1]
    return pl.pallas_call(
        gru_proj_kernel,
        grid=(2,),
        out_shape=jax.ShapeDtypeStruct((2, N, G), jnp.float32),
        in_specs=[
            pl.BlockSpec((N, Din), lambda d: (0, 0)),        # x shared by dirs
            pl.BlockSpec((None, Din, G), lambda d: (d, 0, 0)),
            pl.BlockSpec((None, 1, G), lambda d: (d, 0, 0)),
        ],
        out_specs=pl.BlockSpec((None, N, G), lambda d: (d, 0, 0)),
        compiler_params=pltpu.CompilerParams(
            dimension_semantics=("parallel",),
            vmem_limit_bytes=VMEM_LIMIT),
    )(x_flat, wih, bih)


# -----------------------------------------------------------------------------
# Kernel 2: sequential GRU recurrence, fwd+bwd fused over grid=(2,).
# Only  h @ W_hh  remains on the serial path (single fused-gate matmul).
# Packed-sequence masking: hidden frozen / output zero for t >= chunk_len[b].
# -----------------------------------------------------------------------------
def gru_recurrent_kernel(gi_ref, mask_ref, whh_ref, bhh_ref, out_ref, h_scr):
    T = gi_ref.shape[0]
    B = gi_ref.shape[1]
    H = out_ref.shape[2]
    d = pl.program_id(0)                       # 0 = forward, 1 = backward

    h_scr[...] = jnp.zeros_like(h_scr)
    whh = whh_ref[...]                                          # (H, 3H) bf16
    bhh = jnp.broadcast_to(bhh_ref[...], (B, 3 * H)).astype(jnp.float32)

    def step(i, carry):
        t = jnp.where(d == 0, i, T - 1 - i)
        gi_t = gi_ref[t]                                        # (B, 3H) f32
        m_t = mask_ref[t]                                       # (B, 1)  f32
        h = h_scr[...]                                          # (B, H)  f32

        gh = jnp.dot(h.astype(whh.dtype), whh,
                     preferred_element_type=jnp.float32) + bhh  # (B, 3H)

        # gate order r, z, n (PyTorch GRU convention)
        r = jax.nn.sigmoid(gi_t[:, 0:H] + gh[:, 0:H])
        z = jax.nn.sigmoid(gi_t[:, H:2 * H] + gh[:, H:2 * H])
        n = jnp.tanh(gi_t[:, 2 * H:3 * H] + r * gh[:, 2 * H:3 * H])
        h_new = (1.0 - z) * n + z * h

        # packed-sequence masking
        h_new = m_t * h_new + (1.0 - m_t) * h
        h_scr[...] = h_new
        out_ref[t] = (m_t * h_new).astype(out_ref.dtype)
        return carry

    lax.fori_loop(0, T, step, 0)


def gru_recurrence(gi, mask, whh, bhh):
    # gi: (2, T, B, 3H) f32, mask: (T, B, 1) f32,
    # whh: (2, H, 3H) bf16, bhh: (2, 1, 3H) f32
    _, T, B, G = gi.shape
    H = G // 3
    return pl.pallas_call(
        gru_recurrent_kernel,
        grid=(2,),
        out_shape=jax.ShapeDtypeStruct((2, T, B, H), jnp.bfloat16),
        in_specs=[
            pl.BlockSpec((None, T, B, G), lambda d: (d, 0, 0, 0)),
            pl.BlockSpec((T, B, 1), lambda d: (0, 0, 0)),
            pl.BlockSpec((None, H, G), lambda d: (d, 0, 0)),
            pl.BlockSpec((None, 1, G), lambda d: (d, 0, 0)),
        ],
        out_specs=pl.BlockSpec((None, T, B, H), lambda d: (d, 0, 0, 0)),
        scratch_shapes=[pltpu.VMEM((B, H), jnp.float32)],
        compiler_params=pltpu.CompilerParams(
            dimension_semantics=("parallel",),
            vmem_limit_bytes=VMEM_LIMIT),
    )(gi, mask, whh, bhh)


# -----------------------------------------------------------------------------
# Kernel 3: attention scores (lane-reduce) + classifier projection, batched
# over ALL (t, b) rows in one pass.  Since fc is linear, logits =
# softmax_weight * (o @ W_fc) + b_fc, so the big matmul is attention-free.
# -----------------------------------------------------------------------------
def attn_proj_kernel(o_ref, wa_ref, ba_ref, wfc_ref, s_ref, p_ref):
    o32 = o_ref[...].astype(jnp.float32)                        # (N, nhid)
    wa32 = wa_ref[...].astype(jnp.float32)                      # (1, nhid)
    s_ref[...] = jnp.sum(o32 * wa32, axis=-1, keepdims=True) + ba_ref[...]
    p_ref[...] = jnp.dot(o_ref[...], wfc_ref[...],
                         preferred_element_type=jnp.float32)


def attn_proj(o_flat, w_attn, b_attn, w_fc):
    N, _ = o_flat.shape
    C = w_fc.shape[-1]
    return pl.pallas_call(
        attn_proj_kernel,
        out_shape=(jax.ShapeDtypeStruct((N, 1), jnp.float32),
                   jax.ShapeDtypeStruct((N, C), jnp.float32)),
        in_specs=[pl.BlockSpec(memory_space=pltpu.MemorySpace.VMEM)] * 4,
        out_specs=(pl.BlockSpec(memory_space=pltpu.MemorySpace.VMEM),
                   pl.BlockSpec(memory_space=pltpu.MemorySpace.VMEM)),
        compiler_params=pltpu.CompilerParams(vmem_limit_bytes=VMEM_LIMIT),
    )(o_flat, w_attn, b_attn, w_fc)


# -----------------------------------------------------------------------------
# Kernel 4: softmax over the chunk (time) axis + weighting + fc bias.
# Fully vectorized: axis-0 reduces, one approx reciprocal, one fused multiply.
# -----------------------------------------------------------------------------
def attn_combine_kernel(s_ref, p_ref, bfc_ref, logits_ref):
    s = s_ref[...]                                              # (T, B, 1)
    m = jnp.max(s, axis=0, keepdims=True)                       # (1, B, 1)
    e = jnp.exp(s - m)
    denom = jnp.sum(e, axis=0, keepdims=True)                   # (1, B, 1)
    w = e * pl.reciprocal(denom, approx=True)                   # (T, B, 1)
    logits_ref[...] = w * p_ref[...] + bfc_ref[...]


def attn_combine(s3d, p3d, b_fc):
    T, B, _ = s3d.shape
    C = p3d.shape[-1]
    return pl.pallas_call(
        attn_combine_kernel,
        out_shape=jax.ShapeDtypeStruct((T, B, C), jnp.float32),
        in_specs=[pl.BlockSpec(memory_space=pltpu.MemorySpace.VMEM)] * 3,
        out_specs=pl.BlockSpec(memory_space=pltpu.MemorySpace.VMEM),
        compiler_params=pltpu.CompilerParams(vmem_limit_bytes=VMEM_LIMIT),
    )(s3d, p3d, b_fc)


# -----------------------------------------------------------------------------
# Parameter init + forward wrapper (plain-JAX glue around the Pallas kernels)
# -----------------------------------------------------------------------------
def init_params(key, *, vocab, nhid, nclass, nlayer):
    H = nhid // 2
    keys = iter(jax.random.split(key, 7 + 4 * nlayer))
    k = 1.0 / jnp.sqrt(jnp.float32(H))

    params = {
        "tok_emb": 0.02 * jax.random.normal(next(keys), (vocab, nhid), jnp.float32),
        "speaker_emb": 0.02 * jax.random.normal(next(keys), (3, nhid), jnp.float32),
        "topic_emb": 0.02 * jax.random.normal(next(keys), (100, nhid), jnp.float32),
        "attn_w": (0.1 * jax.random.normal(next(keys), (1, nhid), jnp.float32)
                   ).astype(jnp.bfloat16),
        "attn_b": 0.1 * jax.random.normal(next(keys), (1, 1), jnp.float32),
        "fc_w": (0.1 * jax.random.normal(next(keys), (nhid, nclass), jnp.float32)
                 ).astype(jnp.bfloat16),
        "fc_b": 0.1 * jax.random.normal(next(keys), (1, nclass), jnp.float32),
    }
    for l in range(nlayer):
        din = nhid   # bidirectional: every layer's input width is nhid = 2H
        params[f"gru{l}_wih"] = jax.random.uniform(
            next(keys), (2, din, 3 * H), jnp.float32, -k, k).astype(jnp.bfloat16)
        params[f"gru{l}_whh"] = jax.random.uniform(
            next(keys), (2, H, 3 * H), jnp.float32, -k, k).astype(jnp.bfloat16)
        params[f"gru{l}_bih"] = jax.random.uniform(
            next(keys), (2, 1, 3 * H), jnp.float32, -k, k)
        params[f"gru{l}_bhh"] = jax.random.uniform(
            next(keys), (2, 1, 3 * H), jnp.float32, -k, k)
    return params


def bert_rnn_attn_forward(params, input_ids, attention_mask, chunk_lens,
                          speaker_ids, topic_labels, *, nlayer,
                          speaker_info="none", topic_info="none"):
    B, Ck, S = input_ids.shape
    nhid = params["tok_emb"].shape[1]
    H = nhid // 2
    T = Ck

    ids = input_ids.reshape(-1, S)
    am = attention_mask.reshape(-1, S)

    # TODO(synk): frozen pretrained RoBERTa encoder has no clean Pallas
    # equivalent here; its [CLS] embedding is stood in by a deterministic
    # frozen-token-embedding masked mean (plain-JAX glue).
    tok = params["tok_emb"][ids]                                  # (B*Ck, S, nhid)
    mf = am[..., None].astype(jnp.float32)
    embeddings = (tok * mf).sum(axis=1) / jnp.maximum(mf.sum(axis=1), 1.0)

    if speaker_info == "emb_cls":
        embeddings = embeddings + params["speaker_emb"][speaker_ids.reshape(-1)]
    if topic_info == "emb_cls":
        embeddings = embeddings + params["topic_emb"][topic_labels.reshape(-1)]

    # (B*Ck, nhid) -> time-major flat (T*B, nhid), row = t*B + b
    x = embeddings.reshape(B, Ck, nhid).transpose(1, 0, 2)        # (T, B, nhid)
    x_flat = x.reshape(T * B, nhid).astype(jnp.bfloat16)

    lens = chunk_lens.reshape(-1)
    mask = (jnp.arange(T)[:, None] < lens[None, :]).astype(jnp.float32)[:, :, None]

    # bidirectional multi-layer GRU (inter-layer dropout: eval-mode identity)
    # TODO(synk): at production sizes, tile the projection/attn matmuls over the
    # row dim with a grid instead of full-array VMEM residency.
    for l in range(nlayer):
        gi = gru_input_proj(x_flat, params[f"gru{l}_wih"], params[f"gru{l}_bih"])
        gi = gi.reshape(2, T, B, 3 * H)                           # free reshape
        hout = gru_recurrence(gi, mask,
                              params[f"gru{l}_whh"], params[f"gru{l}_bhh"])
        # TODO(synk): concat is one extra HBM copy per layer; removable with a
        # lane-slab out_spec once H is a multiple of 128.
        x_flat = jnp.concatenate([hout[0], hout[1]], axis=-1).reshape(T * B, nhid)

    # dropout(outputs): eval-mode identity
    s_flat, p_flat = attn_proj(x_flat, params["attn_w"], params["attn_b"],
                               params["fc_w"])
    logits3d = attn_combine(s_flat.reshape(T, B, 1),
                            p_flat.reshape(T, B, -1),
                            params["fc_b"])                       # (T, B, C)

    # .permute(1,0,2).reshape(-1, C): row order = b*chunk_size + t
    logits = logits3d.transpose(1, 0, 2).reshape(B * T, -1)
    return logits


if __name__ == "__main__":
    batch_size, chunk_size, seq_len = 2, 8, 16
    nhid, nclass, nlayer, vocab = 32, 4, 2, 50

    key = jax.random.PRNGKey(0)
    k_par, k_ids, k_mask, k_spk, k_top = jax.random.split(key, 5)

    params = init_params(k_par, vocab=vocab, nhid=nhid, nclass=nclass, nlayer=nlayer)

    input_ids = jax.random.randint(k_ids, (batch_size, chunk_size, seq_len), 0, vocab)
    attention_mask = (jax.random.uniform(k_mask, (batch_size, chunk_size, seq_len))
                      > 0.2).astype(jnp.int32)
    attention_mask = attention_mask.at[:, :, 0].set(1)            # CLS always attended
    chunk_lens = jnp.array([5, 8], dtype=jnp.int32)               # per-dialogue lengths
    speaker_ids = jax.random.randint(k_spk, (batch_size, chunk_size), 0, 3)
    topic_labels = jax.random.randint(k_top, (batch_size, chunk_size), 0, 100)

    logits = bert_rnn_attn_forward(params, input_ids, attention_mask, chunk_lens,
                                   speaker_ids, topic_labels, nlayer=nlayer,
                                   speaker_info="none", topic_info="none")
    logits = jax.block_until_ready(logits)

    assert logits.shape == (batch_size * chunk_size, nclass)
    assert bool(jnp.all(jnp.isfinite(logits)))
    print("KERNEL_OK")
</pallas_src>

<mosaic_0001>
module attributes {stable_mosaic.version = 11 : i64} {
  func.func @gru_proj_kernel(%arg0: i32, %arg1: memref<16x32xbf16, #tpu.memory_space<vmem>>, %arg2: memref<1x32x48xbf16, #tpu.memory_space<vmem>>, %arg3: memref<1x1x48xf32, #tpu.memory_space<vmem>>, %arg4: memref<1x16x48xf32, #tpu.memory_space<vmem>>) attributes {dimension_semantics = [#tpu.dimension_semantics<parallel>], iteration_bounds = array<i64: 2>, scalar_prefetch = 0 : i64, scratch_operands = 0 : i64, tpu.core_type = #tpu.core_type<tc>, window_params = [{pipeline_mode = #tpu.pipeline_mode<synchronous>, transform_indices = @transform_0, window_bounds = array<i64: 16, 32>}, {transform_indices = @transform_1, window_bounds = array<i64: 1, 32, 48>}, {transform_indices = @transform_2, window_bounds = array<i64: 1, 1, 48>}, {transform_indices = @transform_3, window_bounds = array<i64: 1, 16, 48>}]} {
    %c0 = arith.constant 0 : index
    %c0_0 = arith.constant 0 : index
    %0 = vector.load %arg1[%c0, %c0_0] : memref<16x32xbf16, #tpu.memory_space<vmem>>, vector<16x32xbf16>
    %c0_1 = arith.constant 0 : index
    %c0_2 = arith.constant 0 : index
    %c0_3 = arith.constant 0 : index
    %1 = vector.load %arg2[%c0_1, %c0_2, %c0_3] : memref<1x32x48xbf16, #tpu.memory_space<vmem>>, vector<1x32x48xbf16>
    %2 = vector.shape_cast %1 : vector<1x32x48xbf16> to vector<32x48xbf16>
    %cst = arith.constant dense<0.000000e+00> : vector<16x48xf32>
    %3 = tpu.matmul %0, %2, %cst {dimension_numbers = #tpu.dot_dimension_numbers<[1], [0], [0], [1], [0, 0, 1, 1], [], []>} : vector<16x32xbf16>, vector<32x48xbf16>, vector<16x48xf32> -> vector<16x48xf32>
    %c0_4 = arith.constant 0 : index
    %c0_5 = arith.constant 0 : index
    %c0_6 = arith.constant 0 : index
    %4 = vector.load %arg3[%c0_4, %c0_5, %c0_6] : memref<1x1x48xf32, #tpu.memory_space<vmem>>, vector<1x1x48xf32>
    %5 = vector.shape_cast %4 : vector<1x1x48xf32> to vector<1x48xf32>
    %6 = vector.broadcast %5 : vector<1x48xf32> to vector<16x48xf32>
    %7 = arith.addf %3, %6 : vector<16x48xf32>
    %c0_7 = arith.constant 0 : index
    %c0_8 = arith.constant 0 : index
    %c0_9 = arith.constant 0 : index
    %8 = vector.load %arg4[%c0_7, %c0_8, %c0_9] : memref<1x16x48xf32, #tpu.memory_space<vmem>>, vector<1x16x48xf32>
    %9 = vector.shape_cast %8 : vector<1x16x48xf32> to vector<16x48xf32>
    %10 = vector.shape_cast %7 : vector<16x48xf32> to vector<1x16x48xf32>
    tpu.vector_store %arg4[%c0_7, %c0_8, %c0_9], %10 {strides = array<i32>} : memref<1x16x48xf32, #tpu.memory_space<vmem>>, vector<1x16x48xf32>,
    return
  }
  func.func @transform_0(%arg0: i32) -> (i32, i32) {
    %c0_i32 = arith.constant 0 : i32
    %c0_i32_0 = arith.constant 0 : i32
    %c0_i32_1 = arith.constant 0 : i32
    return %c0_i32, %c0_i32_0 : i32, i32
  }
  func.func @transform_1(%arg0: i32) -> (i32, i32, i32) {
    %c0_i32 = arith.constant 0 : i32
    %c0_i32_0 = arith.constant 0 : i32
    %c0_i32_1 = arith.constant 0 : i32
    return %arg0, %c0_i32, %c0_i32_0 : i32, i32, i32
  }
  func.func @transform_2(%arg0: i32) -> (i32, i32, i32) {
    %c0_i32 = arith.constant 0 : i32
    %c0_i32_0 = arith.constant 0 : i32
    %c0_i32_1 = arith.constant 0 : i32
    return %arg0, %c0_i32, %c0_i32_0 : i32, i32, i32
  }
  func.func @transform_3(%arg0: i32) -> (i32, i32, i32) {
    %c0_i32 = arith.constant 0 : i32
    %c0_i32_0 = arith.constant 0 : i32
    %c0_i32_1 = arith.constant 0 : i32
    return %arg0, %c0_i32, %c0_i32_0 : i32, i32, i32
  }
}

</mosaic_0001>

<bundles_post_ra>
// kernel: tpu_custom_call.1
= control target key start
LH: loop header
LB: loop body
LE: loop exit
PB: predicated region body
PF: predicated region fallthrough
CT: control target
= control target key end

     0   :  { %8 = vsyncpa [#allocation3], 0  ;;  %s846_s0 = inlined_call_operand.hbm [shape: bf16[16,32], index: 0, kind: input, shape index: {}]   ;;  %s847_s1 = inlined_call_operand.hbm [shape: bf16[2,32,48], index: 1, kind: input, shape index: {}]   ;;  %s848_s2 = inlined_call_operand.vmem [shape: f32[2,1,48], index: 2, kind: input, shape index: {}]   ;;  %s849_s3 = inlined_call_operand.hbm [shape: f32[2,16,48], index: 3, kind: output, shape index: {}]  }
   0x1   :  { %9 = vsyncpa [#allocation6], 0 }
   0x2   :  { %11 = vsyncpa [#allocation6 + $0x1], 0 }
   0x3   :  { %12 = vsyncpa [#allocation4], 0 }
   0x4   :  { %14 = vsyncpa [#allocation4 + $0x1], 0  ;;  %s658_s12 = smov 0   ;;  %s660_s13 = smov 0  }
   0x5   :  { %s662_s14 = smov 0   ;;  %s664_s15 = smov 0  }
   0x6 LB: > { %s679_s16 = sadd.s32 4294967295, %s627_s15   ;;  %s405_s17 = sadd.s32 4294967294, %s627_s15   ;;  %s627_s15 = sphi %s664_s15, %s871_s15   ;;  %s623_s14 = sphi %s662_s14, %s870_s14   ;;  %s619_s13 = sphi %s660_s13, %s869_s13   ;;  %s615_s12 = sphi %s658_s12, %s868_s12  }
   0x7   : > { %p61_p0 = scmp.ne.s32.totalorder %s619_s13, %s615_s12  ;;  %p850_p1 = scmp.eq.s32.totalorder %s679_s16, 0 }
   0x8   : > { %p117_p3 = scmp.eq.s32.totalorder %s405_s17, 1  ;;  %p406_p5 = scmp.ge.s32.totalorder %s627_s15, 1 }
   0x9   : > { %p688_p4 = por %p850_p1, %p61_p0  ;;  %p124_p7 = scmp.lt.s32.totalorder %s627_s15, 3 }
   0xa   : > { %p693_p6 = por %p117_p3, %p61_p0  ;;  %s629_s21 = smov [#allocation2]  }
   0xb   : > { %s854_s18 = scalar_select %p688_p4, 1, 0 }
   0xc   : > { %s855_s19 = scalar_select %p693_p6, 1, 0 }
   0xd   : > { %p698_p8 = pnand %p406_p5, %p124_p7  ;;  %s136_s22 = sshll.u32 %s629_s21, 4  ;;  %s137_s22 = int_to_ptr.vmem [resolvable:$true] %s136_s22 }
   0xe   : > { %s712_s24 = sadd.s32 1, %s627_s15   ;;  %s48_s25 = sadd.s32 1, %s623_s14 }
   0xf   : > { %s856_s20 = scalar_select %p698_p8, 1, 0 }
  0x10   : > { %p447_p9 = pneg %p698_p8  ;;  %s45_s26 = ssub.s32 %s627_s15, %s712_s24 }
  0x11   : > { %s516_s27 = scalar_lea.vmem %s137_s22, 128  ;;  %p524_p5 = scmp.lt.s32.totalorder %s137_s22, %s137_s22 }
  0x12   : > { %p707_p11 = pnand %p447_p9, %p850_p1  ;;  %p517_p13 = scmp.ne.s32.totalorder %s137_s22, %s516_s27 }
  0x13   : > { %p525_p7 = scmp.lt.s32.totalorder %s516_s27, %s516_s27 }
  0x14   : > { %p507_p12 = pneg %p707_p11 }
  0x15   : > { %p526_p10 = por %p525_p7, %p524_p5 }
  0x16   : > { %p519_p0 = pnand %p517_p13, %p507_p12 }
  0x18   : > { %p520_p3 = pneg %p519_p0 }
  0x1a   : > { %p527_p2 = pnand %p526_p10, %p520_p3 }
  0x1c   : > { %530 = shalt.err (!%p527_p2)
}
  0x1d   : > { %s630_s28 = smov 64   ;;  %s631_s29 = smov 4  }
  0x1e   : > { %450 = dma.hbm_to_vmem [thread:$0]  (!%p707_p11), %s846_s0, 128, %s137_s22, [#allocation3], %s630_s28, %s630_s28, %s631_s29  }
  0x1f   : > { %p46_p2 = scmp.eq.s32.totalorder %s45_s26, 0  ;;  %p55_p9 = scmp.ne.s32.totalorder %s623_s14, %s619_s13 }
  0x20   : > { %p56_p10 = scmp.eq.s32.totalorder %s627_s15, 0  ;;  %p460_p12 = scmp.lt.s32.totalorder %s627_s15, 2 }
  0x21   : > { %s732_s5 = scalar_select %p46_p2, %s623_s14, %s48_s25  }
  0x22   : > { %p57_p13 = por %p56_p10, %p55_p9  ;;  %p858_p0 = scmp.eq.s32.totalorder %s679_s16, 1 }
  0x23   : > { %s150_s7 = sand.u32 1, %s623_s14   ;;  %s426_s8 = sshll.u32 %s627_s15, 8 }
  0x24   : > { %p736_p3 = por %p858_p0, %p55_p9  ;;  %s409_s9 = sshll.u32 %s150_s7, 4 }
  0x25   : > { %s745_s17 = scalar_lea.hbm %s847_s1, %s426_s8  ;;  %s154_s21 = scalar_lea.vmem [#allocation5], %s409_s9 }
  0x26   : > { %s859_s6 = scalar_select %p736_p3, 1, 0 }
  0x27   : > { %s161_s22 = sshll.u32 %s154_s21, 4  ;;  %p747_p11 = pnand %p460_p12, %p57_p13  ;;  %s751_s22 = int_to_ptr.vmem [resolvable:$true] %s161_s22 }
  0x28   : > { %s753_s25 = scalar_lea.sflag [#allocation6], %s150_s7  ;;  %s531_s26 = scalar_lea.hbm %s745_s17, 256 }
  0x29   : > { %p532_p5 = scmp.ne.s32.totalorder %s745_s17, %s531_s26  ;;  %p533_p7 = pneg %p747_p11 }
  0x2a   : > { %s536_s4 = scalar_lea.hbm %s847_s1, 512  ;;  %p537_p10 = scmp.lt.s32.totalorder %s745_s17, %s847_s1 }
  0x2b   : > { %p534_p2 = pnand %p533_p7, %p532_p5  ;;  %p538_p12 = scmp.lt.s32.totalorder %s536_s4, %s531_s26 }
  0x2d   : > { %p535_p9 = pneg %p534_p2  ;;  %p539_p13 = por %p538_p12, %p537_p10 }
  0x2f   : > { %p540_p0 = pnand %p539_p13, %p535_p9 }
  0x31   : > { %543 = shalt.err (!%p540_p0)
}
  0x32   : > { %s544_s7 = scalar_lea.vmem %s751_s22, 256  ;;  %s632_s10 = smov [#allocation5]  }
  0x33   : > { %p545_p1 = scmp.ne.s32.totalorder %s751_s22, %s544_s7  ;;  %s549_s11 = sshll.u32 %s632_s10, 4  ;;  %s550_s11 = int_to_ptr.vmem [resolvable:$false] %s549_s11 }
  0x34   : > { %s551_s21 = scalar_lea.vmem %s550_s11, 512  ;;  %p552_p2 = scmp.lt.s32.totalorder %s751_s22, %s550_s11 }
  0x35   : > { %p547_p6 = pnand %p545_p1, %p533_p7  ;;  %p553_p3 = scmp.lt.s32.totalorder %s551_s21, %s544_s7 }
  0x37   : > { %p548_p5 = pneg %p547_p6  ;;  %p554_p4 = por %p553_p3, %p552_p2 }
  0x39   : > { %p555_p8 = pnand %p554_p4, %p548_p5 }
  0x3b   : > { %558 = shalt.err (!%p555_p8)
}
  0x3c   : > { %454 = dma.hbm_to_vmem [thread:$0]  (!%p747_p11), %s745_s17, 256, %s751_s22, %s753_s25, %s630_s28, %s630_s28, %s631_s29  }
  0x3d   : > { %p861_p1 = scmp.ne.s32.totalorder %s856_s20, 0 }
  0x3e   : > { %p862_p6 = scmp.eq.s32.totalorder (!%p861_p1), %s679_s16, 0 }
  0x3f   : > { %179 = sbr.rel (%p861_p1) target bundleno = 295 (0x127), region = 32 }
  0x44   : > { %602 = dma.done.wait (%p862_p6), [#allocation3], 128   ;;  %p863_p7 = pmov %p862_p6 }
  0x45   : > { %s784_s26 = sand.u32 1, %s619_s13   ;;  %p864_p4 = scmp.ne.s32.totalorder %s854_s18, 0 }
  0x46   : > { %604 = vsyncadd (%p863_p7), [#allocation3], 4294967168  ;;  %s414_s23 = sshll.u32 %s784_s26, 4  ;;  %s186_s27 = scalar_lea.sflag [#allocation6], %s784_s26 }
  0x47   : > { %s189_s30 = scalar_lea.vmem [#allocation5], %s414_s23 }
  0x48   : > { %606 = dma.done.wait (%p864_p4), %s186_s27, 256  }
  0x49   : > { %608 = vsyncadd (%p864_p4), %s186_s27, 4294967040  ;;  %v633_v0 = vmov 0.0   ;;  %vm634_vm0 = vmmov 0   ;;  %v502_v1 = vld [vmem:[%s189_s30 + $0x8] sm:$0xff]   ;;  %v503_v2 = vld [vmem:[%s189_s30] sm:$0xff]   ;;  %vm249_vm1 = vcmask 261120  }
  0x4a   : > { %431 = vmatprep.subr.bf16.mxu0 %v633_v0  ;;  %435 = vmatprep.mubr.msk.bf16.mxu0 %vm634_vm0, %v633_v0  ;;  %v504_v3 = vld [vmem:[#allocation2] sm:$0xff]   ;;  %p215_p8 = scmp.lt.s32.totalorder %s679_s16, 1  ;;  %vm294_vm2 = vcmask 392192   ;;  %s214_s17 = scalar_lea.vmem [#allocation7], %s414_s23 }
  0x4b   : > { %432 = vmatpush3.bf16.msra.mxu0 %v502_v1  ;;  %s311_s22 = sshll.u32 %s214_s17, 4  ;;  %s427_s25 = sshll.u32 %s679_s16, 8  ;;  %s798_s22 = int_to_ptr.vmem [resolvable:$true] %s311_s22 }
  0x4c   : > { %433 = vmatprep.subr.bf16.mxu0 %v633_v0  ;;  %s216_s20 = scalar_select %p215_p8, %s679_s16, 1 }
  0x4d   : > { %s803_s9 = scalar_lea.hbm %s849_s3, %s427_s25  ;;  %s298_s7 = scalar_lea.sflag [#allocation4], %s784_s26 }
  0x4e   : > { %s217_s29 = scalar_lea.vmem %s848_s2, %s216_s20  ;;  %s559_s10 = scalar_lea.vmem %s798_s22, 256 }
  0x4f   : > { %434 = vmatpush3.bf16.msra.mxu0 %v503_v2  ;;  %v416_v4 = vld [vmem:[%s217_s29] ss:$0 sm:$0xff]  ;;  %p560_p3 = scmp.ne.s32.totalorder %s798_s22, %s559_s10  ;;  %p865_p11 = scmp.ne.s32.totalorder %s859_s6, 0 }
  0x50   : > { %s635_s16 = smov [#allocation7]  }
  0x51   : > { %p561_p9 = pnand %p560_p3, %p865_p11  ;;  %s563_s11 = sshll.u32 %s635_s16, 4  ;;  %s564_s11 = int_to_ptr.vmem [resolvable:$false] %s563_s11 }
  0x52   : > { %436 = vmatmul.mubr.msk.bf16.vlgmr.msra.gmra.mxu0 %vm249_vm1, %v504_v3  ;;  %s565_s21 = scalar_lea.vmem %s564_s11, 512  ;;  %p566_p12 = scmp.lt.s32.totalorder %s798_s22, %s564_s11 }
  0x53   : > { %p562_p10 = pneg %p561_p9  ;;  %p567_p13 = scmp.lt.s32.totalorder %s565_s21, %s559_s10 }
  0x55   : > { %p568_p0 = por %p567_p13, %p566_p12 }
  0x57   : > { %p569_p5 = pnand %p568_p0, %p562_p10 }
 0x112   : > { %v287_v5 = vpop.f32.mrf.mxu0 }
 0x113   : > { %v288_v6 = vadd.f32 %v416_v4, %v287_v5 }
 0x114   : > { %v437_v7 = vpop.f32.mrf.mxu0 }
 0x115   : > { %295 = vst.msk [vmem:[%s214_s17] sm:$0xff] %vm294_vm2, %v288_v6 }
 0x116   : > { %v290_v8 = vpop.f32.mrf.mxu0 }
 0x117   : > { %v291_v9 = vadd.f32 %v416_v4, %v290_v8 }
 0x118   : > { %v438_v10 = vpop.f32.mrf.mxu0 }
 0x119   : > { %296 = vst.msk [vmem:[%s214_s17 + $0x8] sm:$0xff] %vm294_vm2, %v291_v9 }
 0x11a   : > { %572 = shalt.err (!%p569_p5)
}
 0x11b   : > { %s573_s23 = scalar_lea.hbm %s803_s9, 256  ;;  %s577_s20 = scalar_lea.hbm %s849_s3, 512 }
 0x11c   : > { %p574_p2 = scmp.ne.s32.totalorder %s803_s9, %s573_s23  ;;  %p578_p7 = scmp.lt.s32.totalorder %s803_s9, %s849_s3 }
 0x11d   : > { %p579_p4 = scmp.lt.s32.totalorder %s577_s20, %s573_s23 }
 0x11e   : > { %p575_p1 = pnand %p574_p2, %p865_p11 }
 0x11f   : > { %p580_p8 = por %p579_p4, %p578_p7 }
 0x120   : > { %p576_p6 = pneg %p575_p1 }
 0x122   : > { %p581_p3 = pnand %p580_p8, %p576_p6 }
 0x124   : > { %584 = shalt.err (!%p581_p3)
}
 0x125   : > { %s636_s29 = smov 128   ;;  %s637_s17 = smov 8  }
 0x126   : > { %445 = dma.vmem_to_hbm [thread:$0]  (%p865_p11), %s798_s22, 256, %s803_s9, %s298_s7, %s636_s29, %s636_s29, %s637_s17  }
 0x127 PF: > { %s326_s25 = sand.u32 1, %s615_s12   ;;  %p866_p9 = scmp.ne.s32.totalorder %s855_s19, 0 }
 0x128   : > { %p867_p10 = scmp.ge.s32.totalorder %s627_s15, 2  ;;  %s327_s4 = scalar_lea.sflag [#allocation4], %s326_s25 }
 0x12a   : > { %p456_p12 = pnand %p867_p10, %p866_p9 }
 0x12c   : > { %p457_p13 = pneg %p456_p12 }
 0x12e   : > { %610 = dma.done.wait (%p457_p13), %s327_s4, 256  }
 0x12f   : > { %612 = vsyncadd (%p457_p13), %s327_s4, 4294967040  ;;  %p17_p0 = scmp.ge.s32.totalorder %s712_s24, 4   ;;  %s868_s12 = smov %s619_s13 }
 0x130   : > { %s869_s13 = smov %s623_s14  ;;  %s870_s14 = smov %s732_s5 }
 0x131   : > { %s871_s15 = smov %s712_s24  ;;  %19 = sbr.rel (!%p17_p0) target bundleno = 6 (0x6), region = 85 }
 0x136   :  { %332 = vsyncpa [#allocation3], 1 }
 0x137   :  { %334 = vsyncpa [#allocation3 + $0x1], 1 }
 0x138   :  { %335 = vsyncpa [#allocation6], 1 }
 0x139   :  { %337 = vsyncpa [#allocation6 + $0x1], 1 }
 0x13a   :  { %338 = vsyncpa [#allocation4], 1 }
 0x13b   :  { %340 = vsyncpa [#allocation4 + $0x1], 1 }

</bundles_post_ra>
